<compile_context>
chip_gen: v6e
topology: v6e:2x2x1
jax: 0.10.0
libtpu: 0.0.40
codegen_flags: <defaults>
</compile_context>

<pallas_src>
import jax
import jax.numpy as jnp
from jax import lax
from jax.experimental import pallas as pl
from jax.experimental.pallas import tpu as pltpu


def _round_up(x, m):
    return ((x + m - 1) // m) * m


def _bayes_linear_kernel(x_ref, wmu_ref, wls_ref, weps_ref, b_ref, o_ref, acc_ref):
    """Grid = (B tiles, O tiles, I reduction tiles); reduction axis last."""
    k = pl.program_id(2)

    @pl.when(k == 0)
    def _():
        acc_ref[...] = jnp.zeros_like(acc_ref)

    # Sample the weight tile via the reparameterization trick (f32 VPU/EUP math).
    w = wmu_ref[...] + jnp.exp(wls_ref[...]) * weps_ref[...]            # (TO, TI)

    # acc += x_tile @ w_tile.T, without materializing the transpose:
    # contract the last (in_features) dim of both operands on the MXU.
    acc_ref[...] += lax.dot_general(
        x_ref[...], w,
        dimension_numbers=(((1,), (1,)), ((), ())),
        preferred_element_type=jnp.float32)                             # (TB, TO)

    @pl.when(k == pl.num_programs(2) - 1)
    def _():
        o_ref[...] = (acc_ref[...] + b_ref[...]).astype(o_ref.dtype)


def bayesian_linear_forward(x, weight_mu, weight_log_sigma,
                            bias_mu, bias_log_sigma, key):
    """Forward pass of BayesianLinear: sample weights/bias, apply linear."""
    out_features, in_features = weight_mu.shape
    batch = x.shape[0]

    # Gaussian noise drawn in plain JAX so semantics match torch.randn_like.
    k_w, k_b = jax.random.split(key)
    eps_w = jax.random.normal(k_w, weight_mu.shape, dtype=jnp.float32)
    eps_b = jax.random.normal(k_b, bias_mu.shape, dtype=jnp.float32)

    # Bias sampling hoisted out of the kernel (tiny; would otherwise be
    # recomputed / re-broadcast on every reduction step).
    bias_sample = (bias_mu + jnp.exp(bias_log_sigma) * eps_b).astype(jnp.float32)

    # ---- Tile sizes: lane dim multiple of 128, sublane multiple of 8. ----
    # Weight tiles of (256, 512) f32, triple-stream + double-buffered, use
    # ~3 MiB VMEM -> comfortably fits the default scoped limit on v5e/v6e/v7x.
    tb = 128 if batch >= 128 else _round_up(batch, 8)
    to = 256 if out_features >= 256 else _round_up(out_features, 128)
    ti = 512 if in_features >= 512 else _round_up(in_features, 128)

    bp = _round_up(batch, tb)
    op = _round_up(out_features, to)
    ip = _round_up(in_features, ti)

    f32 = jnp.float32
    xp = jnp.zeros((bp, ip), f32).at[:batch, :in_features].set(x.astype(f32))
    wmu = jnp.zeros((op, ip), f32).at[:out_features, :in_features].set(
        weight_mu.astype(f32))
    wls = jnp.zeros((op, ip), f32).at[:out_features, :in_features].set(
        weight_log_sigma.astype(f32))
    weps = jnp.zeros((op, ip), f32).at[:out_features, :in_features].set(eps_w)
    bs = jnp.zeros((1, op), f32).at[0, :out_features].set(bias_sample)

    grid = (bp // tb, op // to, ip // ti)

    out = pl.pallas_call(
        _bayes_linear_kernel,
        out_shape=jax.ShapeDtypeStruct((bp, op), jnp.float32),
        grid_spec=pltpu.PrefetchScalarGridSpec(
            num_scalar_prefetch=0,
            grid=grid,
            in_specs=[
                pl.BlockSpec((tb, ti), lambda b, o, k: (b, k)),   # x
                pl.BlockSpec((to, ti), lambda b, o, k: (o, k)),   # weight_mu
                pl.BlockSpec((to, ti), lambda b, o, k: (o, k)),   # weight_log_sigma
                pl.BlockSpec((to, ti), lambda b, o, k: (o, k)),   # eps_w
                pl.BlockSpec((1, to), lambda b, o, k: (0, o)),    # sampled bias
            ],
            out_specs=pl.BlockSpec((tb, to), lambda b, o, k: (b, o)),
            scratch_shapes=[pltpu.VMEM((tb, to), jnp.float32)],
        ),
        compiler_params=pltpu.CompilerParams(
            dimension_semantics=("parallel", "parallel", "arbitrary")),
    )(xp, wmu, wls, weps, bs)

    return out[:batch, :out_features]


def init_params(key, in_features, out_features):
    """Deterministic init matching the PyTorch __init__ (normal(0, 0.1), fill(-4))."""
    k_w, k_b = jax.random.split(key)
    weight_mu = 0.1 * jax.random.normal(k_w, (out_features, in_features), jnp.float32)
    weight_log_sigma = jnp.full((out_features, in_features), -4.0, jnp.float32)
    bias_mu = 0.1 * jax.random.normal(k_b, (out_features,), jnp.float32)
    bias_log_sigma = jnp.full((out_features,), -4.0, jnp.float32)
    return weight_mu, weight_log_sigma, bias_mu, bias_log_sigma


def _reference(x, weight_mu, weight_log_sigma, bias_mu, bias_log_sigma, key):
    k_w, k_b = jax.random.split(key)
    eps_w = jax.random.normal(k_w, weight_mu.shape, dtype=jnp.float32)
    eps_b = jax.random.normal(k_b, bias_mu.shape, dtype=jnp.float32)
    w = weight_mu + jnp.exp(weight_log_sigma) * eps_w
    b = bias_mu + jnp.exp(bias_log_sigma) * eps_b
    return x @ w.T + b


def _check(batch, in_features, out_features, key):
    k_param, k_x, k_noise = jax.random.split(key, 3)
    weight_mu, weight_log_sigma, bias_mu, bias_log_sigma = init_params(
        k_param, in_features, out_features)
    x = jax.random.normal(k_x, (batch, in_features), jnp.float32)

    y = bayesian_linear_forward(x, weight_mu, weight_log_sigma,
                                bias_mu, bias_log_sigma, k_noise)
    jax.block_until_ready(y)

    y_ref = _reference(x, weight_mu, weight_log_sigma,
                       bias_mu, bias_log_sigma, k_noise)
    assert y.shape == (batch, out_features)
    assert jnp.allclose(y, y_ref, atol=1e-4, rtol=1e-4), "mismatch vs reference"


if __name__ == "__main__":
    key = jax.random.PRNGKey(0)
    k_small, k_big = jax.random.split(key)

    # Demo-sized problem consistent with the module's forward.
    _check(batch=8, in_features=32, out_features=32, key=k_small)

    # Slightly larger shape to exercise the multi-tile grid / reduction path.
    _check(batch=16, in_features=1024, out_features=384, key=k_big)

    print("KERNEL_OK")
</pallas_src>

<mosaic_0001>
module attributes {stable_mosaic.version = 11 : i64} {
  func.func @_bayes_linear_kernel(%arg0: i32, %arg1: i32, %arg2: i32, %arg3: memref<8x128xf32, #tpu.memory_space<vmem>>, %arg4: memref<128x128xf32, #tpu.memory_space<vmem>>, %arg5: memref<128x128xf32, #tpu.memory_space<vmem>>, %arg6: memref<128x128xf32, #tpu.memory_space<vmem>>, %arg7: memref<1x128xf32, #tpu.memory_space<vmem>>, %arg8: memref<8x128xf32, #tpu.memory_space<vmem>>, %arg9: memref<8x128xf32, #tpu.memory_space<vmem>>) attributes {dimension_semantics = [#tpu.dimension_semantics<parallel>, #tpu.dimension_semantics<parallel>, #tpu.dimension_semantics<arbitrary>], iteration_bounds = array<i64: 1, 1, 1>, scalar_prefetch = 0 : i64, scratch_operands = 1 : i64, tpu.core_type = #tpu.core_type<tc>, window_params = [{transform_indices = @transform_0, window_bounds = array<i64: 8, 128>}, {transform_indices = @transform_1, window_bounds = array<i64: 128, 128>}, {transform_indices = @transform_2, window_bounds = array<i64: 128, 128>}, {transform_indices = @transform_3, window_bounds = array<i64: 128, 128>}, {transform_indices = @transform_4, window_bounds = array<i64: 1, 128>}, {transform_indices = @transform_5, window_bounds = array<i64: 8, 128>}]} {
    %c0_i32 = arith.constant 0 : i32
    %0 = arith.cmpi eq, %arg2, %c0_i32 : i32
    %1 = arith.extui %0 : i1 to i32
    %c0_i32_0 = arith.constant 0 : i32
    %2 = arith.cmpi ne, %1, %c0_i32_0 : i32
    scf.if %2 {
      %cst_14 = arith.constant 0.000000e+00 : f32
      %17 = vector.broadcast %cst_14 : f32 to vector<8x128xf32>
      %c0_15 = arith.constant 0 : index
      %c0_16 = arith.constant 0 : index
      %18 = vector.load %arg9[%c0_15, %c0_16] : memref<8x128xf32, #tpu.memory_space<vmem>>, vector<8x128xf32>
      tpu.vector_store %arg9[%c0_15, %c0_16], %17 {strides = array<i32>} : memref<8x128xf32, #tpu.memory_space<vmem>>, vector<8x128xf32>,
    } else {
    }
    %c0 = arith.constant 0 : index
    %c0_1 = arith.constant 0 : index
    %3 = vector.load %arg4[%c0, %c0_1] : memref<128x128xf32, #tpu.memory_space<vmem>>, vector<128x128xf32>
    %c0_2 = arith.constant 0 : index
    %c0_3 = arith.constant 0 : index
    %4 = vector.load %arg5[%c0_2, %c0_3] : memref<128x128xf32, #tpu.memory_space<vmem>>, vector<128x128xf32>
    %5 = math.exp %4 : vector<128x128xf32>
    %c0_4 = arith.constant 0 : index
    %c0_5 = arith.constant 0 : index
    %6 = vector.load %arg6[%c0_4, %c0_5] : memref<128x128xf32, #tpu.memory_space<vmem>>, vector<128x128xf32>
    %7 = arith.mulf %5, %6 : vector<128x128xf32>
    %8 = arith.addf %3, %7 : vector<128x128xf32>
    %c0_6 = arith.constant 0 : index
    %c0_7 = arith.constant 0 : index
    %9 = vector.load %arg9[%c0_6, %c0_7] : memref<8x128xf32, #tpu.memory_space<vmem>>, vector<8x128xf32>
    %c0_8 = arith.constant 0 : index
    %c0_9 = arith.constant 0 : index
    %10 = vector.load %arg3[%c0_8, %c0_9] : memref<8x128xf32, #tpu.memory_space<vmem>>, vector<8x128xf32>
    %cst = arith.constant dense<0.000000e+00> : vector<8x128xf32>
    %11 = tpu.matmul %10, %8, %cst {dimension_numbers = #tpu.dot_dimension_numbers<[1], [1], [0], [0], [0, 0, 1, 0], [], []>} : vector<8x128xf32>, vector<128x128xf32>, vector<8x128xf32> -> vector<8x128xf32>
    %12 = arith.addf %9, %11 : vector<8x128xf32>
    %c0_10 = arith.constant 0 : index
    %c0_11 = arith.constant 0 : index
    %13 = vector.load %arg9[%c0_10, %c0_11] : memref<8x128xf32, #tpu.memory_space<vmem>>, vector<8x128xf32>
    tpu.vector_store %arg9[%c0_10, %c0_11], %12 {strides = array<i32>} : memref<8x128xf32, #tpu.memory_space<vmem>>, vector<8x128xf32>,
    %c0_i32_12 = arith.constant 0 : i32
    %14 = arith.cmpi eq, %arg2, %c0_i32_12 : i32
    %15 = arith.extui %14 : i1 to i32
    %c0_i32_13 = arith.constant 0 : i32
    %16 = arith.cmpi ne, %15, %c0_i32_13 : i32
    scf.if %16 {
      %c0_14 = arith.constant 0 : index
      %c0_15 = arith.constant 0 : index
      %17 = vector.load %arg9[%c0_14, %c0_15] : memref<8x128xf32, #tpu.memory_space<vmem>>, vector<8x128xf32>
      %c0_16 = arith.constant 0 : index
      %c0_17 = arith.constant 0 : index
      %18 = vector.load %arg7[%c0_16, %c0_17] : memref<1x128xf32, #tpu.memory_space<vmem>>, vector<1x128xf32>
      %19 = vector.broadcast %18 : vector<1x128xf32> to vector<8x128xf32>
      %20 = arith.addf %17, %19 : vector<8x128xf32>
      %c0_18 = arith.constant 0 : index
      %c0_19 = arith.constant 0 : index
      %21 = vector.load %arg8[%c0_18, %c0_19] : memref<8x128xf32, #tpu.memory_space<vmem>>, vector<8x128xf32>
      tpu.vector_store %arg8[%c0_18, %c0_19], %20 {strides = array<i32>} : memref<8x128xf32, #tpu.memory_space<vmem>>, vector<8x128xf32>,
    } else {
    }
    return
  }
  func.func @transform_0(%arg0: i32, %arg1: i32, %arg2: i32) -> (i32, i32) {
    %c0_i32 = arith.constant 0 : i32
    return %arg0, %arg2 : i32, i32
  }
  func.func @transform_1(%arg0: i32, %arg1: i32, %arg2: i32) -> (i32, i32) {
    %c0_i32 = arith.constant 0 : i32
    return %arg1, %arg2 : i32, i32
  }
  func.func @transform_2(%arg0: i32, %arg1: i32, %arg2: i32) -> (i32, i32) {
    %c0_i32 = arith.constant 0 : i32
    return %arg1, %arg2 : i32, i32
  }
  func.func @transform_3(%arg0: i32, %arg1: i32, %arg2: i32) -> (i32, i32) {
    %c0_i32 = arith.constant 0 : i32
    return %arg1, %arg2 : i32, i32
  }
  func.func @transform_4(%arg0: i32, %arg1: i32, %arg2: i32) -> (i32, i32) {
    %c0_i32 = arith.constant 0 : i32
    %c0_i32_0 = arith.constant 0 : i32
    return %c0_i32, %arg1 : i32, i32
  }
  func.func @transform_5(%arg0: i32, %arg1: i32, %arg2: i32) -> (i32, i32) {
    %c0_i32 = arith.constant 0 : i32
    return %arg0, %arg1 : i32, i32
  }
}

</mosaic_0001>

<bundles_post_ra>
// kernel: tpu_custom_call.1
= control target key start
LH: loop header
LB: loop body
LE: loop exit
PB: predicated region body
PF: predicated region fallthrough
CT: control target
= control target key end

     0   :  { %10 = vsyncpa [#allocation4], 0  ;;  %s580_s0 = inlined_call_operand.hbm [shape: f32[8,128], index: 0, kind: input, shape index: {}]   ;;  %s581_s1 = inlined_call_operand.hbm [shape: f32[128,128], index: 1, kind: input, shape index: {}]   ;;  %s582_s2 = inlined_call_operand.hbm [shape: f32[128,128], index: 2, kind: input, shape index: {}]   ;;  %s583_s3 = inlined_call_operand.hbm [shape: f32[128,128], index: 3, kind: input, shape index: {}]   ;;  %s584_s4 = inlined_call_operand.vmem [shape: f32[1,128], index: 4, kind: input, shape index: {}]   ;;  %s585_s5 = inlined_call_operand.hbm [shape: f32[8,128], index: 5, kind: output, shape index: {}]  }
   0x1   :  { %11 = vsyncpa [#allocation7], 0 }
   0x2   :  { %12 = vsyncpa [#allocation10], 0 }
   0x3   :  { %13 = vsyncpa [#allocation5], 0  ;;  %s497_s18 = smov [#allocation6]  }
   0x4   :  { %s29_s19 = sshll.u32 %s497_s18, 4  ;;  %s30_s19 = int_to_ptr.vmem [resolvable:$true] %s29_s19 }
   0x5   :  { %s397_s20 = scalar_lea.vmem %s30_s19, 2048  ;;  %p402_p1 = scmp.lt.s32.totalorder %s30_s19, %s30_s19 }
   0x6   :  { %p398_p0 = scmp.ne.s32.totalorder %s30_s19, %s397_s20  ;;  %p403_p2 = scmp.lt.s32.totalorder %s397_s20, %s397_s20 }
   0x8   :  { %p404_p3 = por %p403_p2, %p402_p1 }
   0xa   :  { %p405_p4 = pnand %p404_p3, %p398_p0 }
   0xc   :  { %408 = shalt.err (!%p405_p4)
}
   0xd   :  { %s498_s21 = smov 128   ;;  %s499_s22 = smov 8  }
   0xe   :  { %35 = dma.hbm_to_vmem [thread:$0]  %s581_s1, 2048, %s30_s19, [#allocation7], %s498_s21, %s498_s21, %s499_s22  }
   0xf   :  { %s500_s25 = smov [#allocation3]   ;;  %s501_s27 = smov [#allocation8]  }
  0x10   :  { %s20_s26 = sshll.u32 %s500_s25, 4  ;;  %s41_s28 = sshll.u32 %s501_s27, 4  ;;  %s21_s26 = int_to_ptr.vmem [resolvable:$true] %s20_s26  ;;  %s42_s28 = int_to_ptr.vmem [resolvable:$true] %s41_s28 }
  0x11   :  { %s417_s29 = scalar_lea.vmem %s21_s26, 128  ;;  %p422_p6 = scmp.lt.s32.totalorder %s21_s26, %s21_s26 }
  0x12   :  { %p418_p5 = scmp.ne.s32.totalorder %s21_s26, %s417_s29  ;;  %p423_p7 = scmp.lt.s32.totalorder %s417_s29, %s417_s29 }
  0x14   :  { %p424_p8 = por %p423_p7, %p422_p6 }
  0x16   :  { %p425_p9 = pnand %p424_p8, %p418_p5 }
  0x18   :  { %428 = shalt.err (!%p425_p9)
}
  0x19   :  { %23 = dma.hbm_to_vmem [thread:$0]  %s580_s0, 128, %s21_s26, [#allocation4]  }
  0x1a   :  { %s437_s7 = scalar_lea.vmem %s42_s28, 2048  ;;  %p442_p11 = scmp.lt.s32.totalorder %s42_s28, %s42_s28 }
  0x1b   :  { %p438_p10 = scmp.ne.s32.totalorder %s42_s28, %s437_s7  ;;  %p443_p12 = scmp.lt.s32.totalorder %s437_s7, %s437_s7 }
  0x1d   :  { %p444_p13 = por %p443_p12, %p442_p11 }
  0x1f   :  { %p445_p0 = pnand %p444_p13, %p438_p10 }
  0x21   :  { %448 = shalt.err (!%p445_p0)
}
  0x22   :  { %47 = dma.hbm_to_vmem [thread:$0]  %s582_s2, 2048, %s42_s28, [#allocation7], %s498_s21, %s498_s21, %s499_s22  }
  0x23   :  { %s502_s9 = smov [#allocation9]  }
  0x24   :  { %s53_s10 = sshll.u32 %s502_s9, 4  ;;  %s54_s10 = int_to_ptr.vmem [resolvable:$true] %s53_s10 }
  0x25   :  { %s457_s11 = scalar_lea.vmem %s54_s10, 2048  ;;  %p462_p2 = scmp.lt.s32.totalorder %s54_s10, %s54_s10 }
  0x26   :  { %p458_p1 = scmp.ne.s32.totalorder %s54_s10, %s457_s11  ;;  %p463_p3 = scmp.lt.s32.totalorder %s457_s11, %s457_s11 }
  0x28   :  { %p464_p4 = por %p463_p3, %p462_p2 }
  0x2a   :  { %p465_p5 = pnand %p464_p4, %p458_p1 }
  0x2c   :  { %468 = shalt.err (!%p465_p5)
}
  0x2d   :  { %59 = dma.hbm_to_vmem [thread:$0]  %s583_s3, 2048, %s54_s10, [#allocation10], %s498_s21, %s498_s21, %s499_s22  }
  0x2e   :  { %489 = dma.done.wait [#allocation4], 128  }
  0x2f   :  { %490 = vsyncadd [#allocation4], 4294967168 }
  0x30   :  { %491 = dma.done.wait [#allocation7], 4096  }
  0x31   :  { %492 = vsyncadd [#allocation7], 4294963200 }
  0x32   :  { %493 = dma.done.wait [#allocation10], 2048  }
  0x33   :  { %494 = vsyncadd [#allocation10], 4294965248  ;;  %v503_v0 = vmov 0.0   ;;  %vm504_vm0 = vmmov 0   ;;  %v110_v1 = vld [vmem:[#allocation8 + $0x78] sm:$0xff]  ;;  %v109_v3 = vld [vmem:[#allocation8 + $0x70] sm:$0xff] }
  0x34   :  { %313 = vmatprep.subr.mxu0 %v503_v0  ;;  %345 = vmatprep.mubr.msk.f32.mxu0 %vm504_vm0, %v503_v0  ;;  %v141_v2 = vmul.f32 1.442695, %v110_v1  ;;  %v139_v4 = vmul.f32 1.442695, %v109_v3  ;;  %v108_v5 = vld [vmem:[#allocation8 + $0x68] sm:$0xff]  ;;  %v107_v7 = vld [vmem:[#allocation8 + $0x60] sm:$0xff] }
  0x35   :  { %v137_v6 = vmul.f32 1.442695, %v108_v5  ;;  %v135_v8 = vmul.f32 1.442695, %v107_v7  ;;  %v106_v9 = vld [vmem:[#allocation8 + $0x58] sm:$0xff]  ;;  %v105_v11 = vld [vmem:[#allocation8 + $0x50] sm:$0xff] }
  0x36   :  { %357 = vpow2.f32 %v141_v2  ;;  %v133_v10 = vmul.f32 1.442695, %v106_v9  ;;  %v131_v12 = vmul.f32 1.442695, %v105_v11  ;;  %v158_v13 = vld [vmem:[#allocation9 + $0x78] sm:$0xff]  ;;  %v104_v14 = vld [vmem:[#allocation8 + $0x48] sm:$0xff] }
  0x37   :  { %359 = vpow2.f32 %v139_v4  ;;  %v157_v15 = vld [vmem:[#allocation9 + $0x70] sm:$0xff]  ;;  %v94_v17 = vld [vmem:[#allocation6 + $0x78] sm:$0xff]  ;;  %v129_v20 = vmul.f32 1.442695, %v104_v14  ;;  %v156_v24 = vld [vmem:[#allocation9 + $0x68] sm:$0xff]  ;;  %s505_s13 = smov [#allocation11]  }
  0x38   :  { %361 = vpow2.f32 %v137_v6  ;;  %v93_v22 = vld [vmem:[#allocation6 + $0x70] sm:$0xff]  ;;  %v103_v25 = vld [vmem:[#allocation8 + $0x40] sm:$0xff]  ;;  %v92_v31 = vld [vmem:[#allocation6 + $0x68] sm:$0xff]  ;;  %s284_s14 = sshll.u32 %s505_s13, 4  ;;  %s285_s14 = int_to_ptr.vmem [resolvable:$true] %s284_s14 }
  0x39   :  { %363 = vpow2.f32 %v135_v8  ;;  %v127_v29 = vmul.f32 1.442695, %v103_v25  ;;  %v155_v32 = vld [vmem:[#allocation9 + $0x60] sm:$0xff]  ;;  %v102_v33 = vld [vmem:[#allocation8 + $0x38] sm:$0xff]  ;;  %v101_v40 = vld [vmem:[#allocation8 + $0x30] sm:$0xff]  ;;  %s469_s15 = scalar_lea.vmem %s285_s14, 128  ;;  %p474_p7 = scmp.lt.s32.totalorder %s285_s14, %s285_s14 }
  0x3a   :  { %365 = vpow2.f32 %v133_v10  ;;  %v125_v36 = vmul.f32 1.442695, %v102_v33  ;;  %v91_v38 = vld [vmem:[#allocation6 + $0x60] sm:$0xff]  ;;  %v154_v39 = vld [vmem:[#allocation9 + $0x58] sm:$0xff]  ;;  %v123_v43 = vmul.f32 1.442695, %v101_v40  ;;  %p470_p6 = scmp.ne.s32.totalorder %s285_s14, %s469_s15  ;;  %p475_p8 = scmp.lt.s32.totalorder %s469_s15, %s469_s15 }
  0x3b   :  { %367 = vpow2.f32 %v131_v12  ;;  %v90_v45 = vld [vmem:[#allocation6 + $0x58] sm:$0xff]  ;;  %v153_v46 = vld [vmem:[#allocation9 + $0x50] sm:$0xff]  ;;  %v100_v47 = vld [vmem:[#allocation8 + $0x28] sm:$0xff] }
  0x3c   :  { %369 = vpow2.f32 %v129_v20  ;;  %v121_v50 = vmul.f32 1.442695, %v100_v47  ;;  %v89_v52 = vld [vmem:[#allocation6 + $0x50] sm:$0xff]  ;;  %v152_v53 = vld [vmem:[#allocation9 + $0x48] sm:$0xff]  ;;  %v99_v54 = vld [vmem:[#allocation8 + $0x20] sm:$0xff]  ;;  %p476_p9 = por %p475_p8, %p474_p7 }
  0x3d   :  { %371 = vpow2.f32 %v127_v29  ;;  %v119_v57 = vmul.f32 1.442695, %v99_v54  ;;  %v88_v59 = vld [vmem:[#allocation6 + $0x48] sm:$0xff]  ;;  %v151_v60 = vld [vmem:[#allocation9 + $0x40] sm:$0xff]  ;;  %v98_v61 = vld [vmem:[#allocation8 + $0x18] sm:$0xff] }
  0x3e   :  { %373 = vpow2.f32 %v125_v36  ;;  %v117_v1 = vmul.f32 1.442695, %v98_v61  ;;  %v87_v3 = vld [vmem:[#allocation6 + $0x40] sm:$0xff]  ;;  %v150_v4 = vld [vmem:[#allocation9 + $0x38] sm:$0xff]  ;;  %v97_v5 = vld [vmem:[#allocation8 + $0x10] sm:$0xff]  ;;  %p477_p10 = pnand %p476_p9, %p470_p6 }
  0x3f   :  { %375 = vpow2.f32 %v123_v43  ;;  %v115_v8 = vmul.f32 1.442695, %v97_v5  ;;  %v86_v10 = vld [vmem:[#allocation6 + $0x38] sm:$0xff]  ;;  %v149_v11 = vld [vmem:[#allocation9 + $0x30] sm:$0xff]  ;;  %v96_v12 = vld [vmem:[#allocation8 + $0x8] sm:$0xff] }
  0x40   :  { %377 = vpow2.f32 %v121_v50  ;;  %v147_v25 = vld [vmem:[#allocation9 + $0x20] sm:$0xff]  ;;  %v144_v40 = vld [vmem:[#allocation9 + $0x8] sm:$0xff]  ;;  %v192_v50 = vld [vmem:[#allocation3] sm:$0xff] }
  0x41   :  { %379 = vpow2.f32 %v119_v57  ;;  %v83_v29 = vld [vmem:[#allocation6 + $0x20] sm:$0xff] }
  0x42   :  { %381 = vpow2.f32 %v117_v1 }
  0x43   :  { %v358_v16 = vpop.eup %357  ;;  %383 = vpow2.f32 %v115_v8 }
  0x44   :  { %v360_v18 = vpop.eup %359  ;;  %v174_v19 = vmul.f32 %v358_v16, %v158_v13 }
  0x45   :  { %v362_v21 = vpop.eup %361  ;;  %v173_v23 = vmul.f32 %v360_v18, %v157_v15  ;;  %v113_v15 = vmul.f32 1.442695, %v96_v12  ;;  %v148_v18 = vld [vmem:[#allocation9 + $0x28] sm:$0xff] }
  0x46   :  { %v190_v26 = vadd.f32 %v174_v19, %v94_v17  ;;  %v172_v28 = vmul.f32 %v362_v21, %v156_v24  ;;  %v364_v30 = vpop.eup %363  ;;  %v85_v17 = vld [vmem:[#allocation6 + $0x30] sm:$0xff]  ;;  %v95_v19 = vld [vmem:[#allocation8] sm:$0xff]  ;;  %v84_v24 = vld [vmem:[#allocation6 + $0x28] sm:$0xff] }
  0x47   :  { %v189_v27 = vadd.f32 %v173_v23, %v93_v22  ;;  %v171_v35 = vmul.f32 %v364_v30, %v155_v32  ;;  %v366_v37 = vpop.eup %365  ;;  %385 = vpow2.f32 %v113_v15  ;;  %v111_v22 = vmul.f32 1.442695, %v95_v19  ;;  %v146_v30 = vld [vmem:[#allocation9 + $0x18] sm:$0xff] }
  0x48   :  { %314 = vmatpush3.xpose.msra.mxu0 %v190_v26  ;;  %v188_v34 = vadd.f32 %v172_v28, %v92_v31  ;;  %v170_v42 = vmul.f32 %v366_v37, %v154_v39  ;;  %v368_v44 = vpop.eup %367  ;;  %v81_v39 = vld [vmem:[#allocation6 + $0x10] sm:$0xff] }
  0x49   :  { %315 = vmatprep.subr.mxu0 %v503_v0  ;;  %v187_v41 = vadd.f32 %v171_v35, %v91_v38  ;;  %v169_v49 = vmul.f32 %v368_v44, %v153_v46  ;;  %v370_v51 = vpop.eup %369  ;;  %387 = vpow2.f32 %v111_v22  ;;  %v145_v35 = vld [vmem:[#allocation9 + $0x10] sm:$0xff]  ;;  %v80_v44 = vld [vmem:[#allocation6 + $0x8] sm:$0xff] }
  0x4a   :  { %v186_v48 = vadd.f32 %v170_v42, %v90_v45  ;;  %v168_v56 = vmul.f32 %v370_v51, %v152_v53  ;;  %v372_v58 = vpop.eup %371  ;;  %v143_v45 = vld [vmem:[#allocation9] sm:$0xff]  ;;  %v295_v51 = vld [vmem:[%s584_s4] ss:$0 sm:$0xff] }
  0x4b   :  { %v185_v55 = vadd.f32 %v169_v49, %v89_v52  ;;  %v167_v63 = vmul.f32 %v372_v58, %v151_v60  ;;  %v374_v2 = vpop.eup %373 }
  0x4c   :  { %316 = vmatpush3.xpose.msra.mxu0 %v189_v27  ;;  %v184_v62 = vadd.f32 %v168_v56, %v88_v59  ;;  %v166_v7 = vmul.f32 %v374_v2, %v150_v4  ;;  %v376_v9 = vpop.eup %375 }
  0x4d   :  { %317 = vmatprep.subr.mxu0 %v503_v0  ;;  %v183_v6 = vadd.f32 %v167_v63, %v87_v3  ;;  %v165_v14 = vmul.f32 %v376_v9, %v149_v11  ;;  %v378_v16 = vpop.eup %377 }
  0x4e   :  { %v182_v13 = vadd.f32 %v166_v7, %v86_v10  ;;  %v164_v21 = vmul.f32 %v378_v16, %v148_v18  ;;  %v380_v23 = vpop.eup %379 }
  0x4f   :  { %v181_v20 = vadd.f32 %v165_v14, %v85_v17  ;;  %v163_v27 = vmul.f32 %v380_v23, %v147_v25  ;;  %v382_v28 = vpop.eup %381 }
  0x50   :  { %318 = vmatpush3.xpose.msra.mxu0 %v188_v34  ;;  %v180_v26 = vadd.f32 %v164_v21, %v84_v24  ;;  %v162_v32 = vmul.f32 %v382_v28, %v146_v30  ;;  %v384_v33 = vpop.eup %383  ;;  %v82_v34 = vld [vmem:[#allocation6 + $0x18] sm:$0xff] }
  0x51   :  { %319 = vmatprep.subr.mxu0 %v503_v0  ;;  %v179_v31 = vadd.f32 %v163_v27, %v83_v29  ;;  %v161_v37 = vmul.f32 %v384_v33, %v145_v35 }
  0x52   :  { %v178_v36 = vadd.f32 %v162_v32, %v82_v34 }
  0x54   :  { %320 = vmatpush3.xpose.msra.mxu0 %v187_v41  ;;  %v386_v38 = vpop.eup %385  ;;  %v177_v41 = vadd.f32 %v161_v37, %v81_v39 }
  0x55   :  { %321 = vmatprep.subr.mxu0 %v503_v0  ;;  %v160_v42 = vmul.f32 %v386_v38, %v144_v40 }
  0x56   :  { %v388_v43 = vpop.eup %387 }
  0x57   :  { %v176_v46 = vadd.f32 %v160_v42, %v80_v44  ;;  %v159_v47 = vmul.f32 %v388_v43, %v143_v45 }
  0x58   :  { %322 = vmatpush3.xpose.msra.mxu0 %v186_v48  ;;  %v79_v48 = vld [vmem:[#allocation6] sm:$0xff] }
  0x59   :  { %323 = vmatprep.subr.mxu0 %v503_v0  ;;  %v175_v49 = vadd.f32 %v159_v47, %v79_v48 }
  0x5c   :  { %324 = vmatpush3.xpose.msra.mxu0 %v185_v55 }
  0x5d   :  { %325 = vmatprep.subr.mxu0 %v503_v0 }
  0x60   :  { %326 = vmatpush3.xpose.msra.mxu0 %v184_v62 }
  0x61   :  { %327 = vmatprep.subr.mxu0 %v503_v0 }
  0x64   :  { %328 = vmatpush3.xpose.msra.mxu0 %v183_v6 }
  0x65   :  { %329 = vmatprep.subr.mxu0 %v503_v0 }
  0x68   :  { %330 = vmatpush3.xpose.msra.mxu0 %v182_v13 }
  0x69   :  { %331 = vmatprep.subr.mxu0 %v503_v0 }
  0x6c   :  { %332 = vmatpush3.xpose.msra.mxu0 %v181_v20 }
  0x6d   :  { %333 = vmatprep.subr.mxu0 %v503_v0 }
  0x70   :  { %334 = vmatpush3.xpose.msra.mxu0 %v180_v26 }
  0x71   :  { %335 = vmatprep.subr.mxu0 %v503_v0 }
  0x74   :  { %336 = vmatpush3.xpose.msra.mxu0 %v179_v31 }
  0x75   :  { %337 = vmatprep.subr.mxu0 %v503_v0 }
  0x78   :  { %338 = vmatpush3.xpose.msra.mxu0 %v178_v36 }
  0x79   :  { %339 = vmatprep.subr.mxu0 %v503_v0 }
  0x7c   :  { %340 = vmatpush3.xpose.msra.mxu0 %v177_v41 }
  0x7d   :  { %341 = vmatprep.subr.mxu0 %v503_v0 }
  0x80   :  { %342 = vmatpush3.xpose.msra.mxu0 %v176_v46 }
  0x81   :  { %343 = vmatprep.subr.mxu0 %v503_v0 }
  0x84   :  { %344 = vmatpush3.xpose.msra.mxu0 %v175_v49 }
  0x87   :  { %346 = vmatmul.mubr.f32.vlgmr.msra.gmra.mxu0 %v192_v50 }
 0x147   :  { %v259_v52 = vpop.f32.mrf.mxu0 }
 0x148   :  { %v276_v53 = vadd.f32 %v295_v51, %v259_v52 }
 0x149   :  { %v347_v54 = vpop.f32.mrf.mxu0 }
 0x14a   :  { %277 = vst [vmem:[#allocation11] sm:$0xff] %v276_v53 }
 0x14b   :  { %480 = shalt.err (!%p477_p10)
}
 0x14c   :  { %287 = dma.vmem_to_hbm [thread:$0]  %s285_s14, 128, %s585_s5, [#allocation5]  }
 0x14d   :  { %495 = dma.done.wait [#allocation5], 128  }
 0x14e   :  { %496 = vsyncadd [#allocation5], 4294967168 }
 0x14f   :  { %291 = vsyncpa [#allocation4], 1 }
 0x150   :  { %292 = vsyncpa [#allocation7], 1 }
 0x151   :  { %293 = vsyncpa [#allocation10], 1 }
 0x152   :  { %294 = vsyncpa [#allocation5], 1 }

</bundles_post_ra>
